<compile_context>
chip_gen: v5e
topology: v5e:2x2
jax: 0.10.0
libtpu: 0.0.40
codegen_flags: <defaults>
</compile_context>

<pallas_src>
import functools

import jax
import jax.numpy as jnp
from jax.experimental import pallas as pl
from jax.experimental.pallas import tpu as pltpu

MAX_TILE_COLS = 128 * 1024   # column tile for huge 2-D terms (~1.5 MiB f32 @ 3 rows)


def _col_tile(n_cols):
    """Whole array if it fits one big block, else a large 128-aligned tile."""
    return n_cols if n_cols <= MAX_TILE_COLS else MAX_TILE_COLS


# --------------------------------------------------------------------------
# Kernels.  Each accumulates a raw sum into a resident (1, 1) f32 output.
# --------------------------------------------------------------------------
def _bce_sum_kernel(x_ref, y_ref, o_ref, *, n_cols, tile_cols):
    """sum over block of bce_with_logits(x, broadcast(y))."""
    j = pl.program_id(0)

    @pl.when(j == 0)
    def _init():
        o_ref[...] = jnp.zeros_like(o_ref)

    x = x_ref[...].astype(jnp.float32)           # (R, T) native dtype -> f32
    y = y_ref[...].astype(jnp.float32)           # (1, T), broadcasts over rows
    # Stable BCE-with-logits: max(x,0) - x*y + log1p(exp(-|x|))
    bce = jnp.maximum(x, 0.0) - x * y + jnp.log1p(jnp.exp(-jnp.abs(x)))
    if n_cols % tile_cols:                       # ragged tail (trace-time check)
        col = j * tile_cols + jax.lax.broadcasted_iota(jnp.int32, bce.shape, 1)
        bce = jnp.where(col < n_cols, bce, 0.0)
    o_ref[...] += jnp.sum(jnp.sum(bce, axis=0, keepdims=True),
                          axis=1, keepdims=True)


def _mse_ignore_sum_kernel(x_ref, y_ref, o_ref, *, n_cols, tile_cols,
                           ignore_index):
    """sum over block of (x * (y != ignore) - y)^2 with y broadcast over rows."""
    j = pl.program_id(0)

    @pl.when(j == 0)
    def _init():
        o_ref[...] = jnp.zeros_like(o_ref)

    x = x_ref[...].astype(jnp.float32)           # (R, T)
    y = y_ref[...].astype(jnp.float32)           # (1, T)
    m = (y != ignore_index).astype(jnp.float32)  # ignore-mask rebuilt in-kernel
    d = x * m - y
    sq = d * d
    if n_cols % tile_cols:
        col = j * tile_cols + jax.lax.broadcasted_iota(jnp.int32, sq.shape, 1)
        sq = jnp.where(col < n_cols, sq, 0.0)
    o_ref[...] += jnp.sum(jnp.sum(sq, axis=0, keepdims=True),
                          axis=1, keepdims=True)


def _link_sum_kernel(x_ref, y_ref, cm_ref, nm_ref, o_ref):
    """sum of (x * outer(cm==1, nm==1) - y)^2 over a whole (C, curr, next) block."""
    x = x_ref[...].astype(jnp.float32)                       # (C, curr, next)
    y = y_ref[...].astype(jnp.float32)                       # (1, curr, next)
    cm = (cm_ref[...].astype(jnp.float32) == 1.0).astype(jnp.float32)  # (curr, 1)
    nm = (nm_ref[...].astype(jnp.float32) == 1.0).astype(jnp.float32)  # (1, next)
    mask = cm * nm                                           # outer product in-kernel
    d = x * mask - y
    s = jnp.sum(d * d, axis=0)                               # (curr, next)
    o_ref[...] = jnp.sum(jnp.sum(s, axis=0, keepdims=True), axis=1, keepdims=True)


# --------------------------------------------------------------------------
# Drivers: score tensor + tiny gt vectors -> raw f32 sum (scalar).
# --------------------------------------------------------------------------
def _reduce_2d(kernel_fn, x, gvec, **static):
    rows, n_cols = x.shape
    tile = _col_tile(n_cols)
    nt = pl.cdiv(n_cols, tile)
    kern = functools.partial(kernel_fn, n_cols=n_cols, tile_cols=tile, **static)
    out = pl.pallas_call(
        kern,
        out_shape=jax.ShapeDtypeStruct((1, 1), jnp.float32),
        grid=(nt,),
        in_specs=[pl.BlockSpec((rows, tile), lambda j: (0, j)),
                  pl.BlockSpec((1, tile), lambda j: (0, j))],
        out_specs=pl.BlockSpec((1, 1), lambda j: (0, 0)),
        compiler_params=pltpu.CompilerParams(dimension_semantics=("arbitrary",)),
    )(x, gvec.reshape(1, n_cols))
    return out[0, 0]


def _reduce_link(x, gt, cm_raw, nm_raw):
    c, curr, nxt = x.shape
    out = pl.pallas_call(
        _link_sum_kernel,
        out_shape=jax.ShapeDtypeStruct((1, 1), jnp.float32),
        grid=(1,),
        in_specs=[pl.BlockSpec((c, curr, nxt), lambda i: (0, 0, 0)),
                  pl.BlockSpec((1, curr, nxt), lambda i: (0, 0, 0)),
                  pl.BlockSpec((curr, 1), lambda i: (0, 0)),
                  pl.BlockSpec((1, nxt), lambda i: (0, 0))],
        out_specs=pl.BlockSpec((1, 1), lambda i: (0, 0)),
        compiler_params=pltpu.CompilerParams(dimension_semantics=("arbitrary",)),
    )(x, gt, cm_raw.reshape(curr, 1), nm_raw.reshape(1, nxt))
    return out[0, 0]


# --------------------------------------------------------------------------
# TrackingLoss forward (trans=None path)
# --------------------------------------------------------------------------
def tracking_loss(det_split, gt_det, gt_link, gt_new, gt_end,
                  det_score, link_score, new_score, end_score,
                  det_ratio=0.4, ignore_index=-1):
    det_split = tuple(int(s) for s in det_split)

    # det term: det_ratio * mean(bce_with_logits(det_score, broadcast(gt_det)))
    bce_sum = _reduce_2d(_bce_sum_kernel, det_score, gt_det)
    loss = det_ratio * bce_sum / det_score.size

    # new term: 0.4 * mean((new_score * mask - broadcast(gt_new[d0:]))^2)
    new_sum = _reduce_2d(_mse_ignore_sum_kernel, new_score,
                         gt_new[det_split[0]:], ignore_index=ignore_index)
    loss += 0.4 * new_sum / new_score.size

    # end term: 0.4 * mean((end_score * mask - broadcast(gt_end[:-dL]))^2)
    end_gt = gt_end[:gt_end.shape[0] - det_split[-1]]
    end_sum = _reduce_2d(_mse_ignore_sum_kernel, end_score, end_gt,
                         ignore_index=ignore_index)
    loss += 0.4 * end_sum / end_score.size

    # link terms (weight 1.0).  idx_base stays 0, matching the reference code.
    for i in range(len(link_score)):
        curr, nxt = det_split[i], det_split[i + 1]
        idx_base = 0
        cm = gt_det[idx_base:idx_base + curr]
        nm = gt_det[idx_base + curr:idx_base + curr + nxt]
        link_sum = _reduce_link(link_score[i], gt_link[i], cm, nm)
        loss += link_sum / link_score[i].size

    return loss


# --------------------------------------------------------------------------
# Pure-jnp reference mirroring the PyTorch module
# --------------------------------------------------------------------------
def _reference(det_split, gt_det, gt_link, gt_new, gt_end,
               det_score, link_score, new_score, end_score,
               det_ratio=0.4, ignore_index=-1):
    f32 = jnp.float32
    # DetLoss('bce')
    y = jnp.broadcast_to(gt_det.astype(f32)[None, :], det_score.shape)
    bce = (jnp.maximum(det_score, 0.0) - det_score * y
           + jnp.log1p(jnp.exp(-jnp.abs(det_score))))
    loss = det_ratio * jnp.mean(bce)
    # DetLoss('l2') on new_score
    gt = gt_new.astype(f32)[det_split[0]:]
    y = jnp.broadcast_to(gt[None, :], new_score.shape)
    m = (y != ignore_index).astype(f32)
    loss += 0.4 * jnp.mean((new_score * m - y) ** 2)
    # DetLoss('l2') on end_score
    gt = gt_end.astype(f32)[:gt_end.shape[0] - det_split[-1]]
    y = jnp.broadcast_to(gt[None, :], end_score.shape)
    m = (y != ignore_index).astype(f32)
    loss += 0.4 * jnp.mean((end_score * m - y) ** 2)
    # LinkLoss('l2_softmax' -> MSE)
    for i in range(len(link_score)):
        curr, nxt = det_split[i], det_split[i + 1]
        idx_base = 0
        cm = (gt_det[idx_base:idx_base + curr] == 1).astype(f32)
        nm = (gt_det[idx_base + curr:idx_base + curr + nxt] == 1).astype(f32)
        mk = jnp.broadcast_to((cm[:, None] * nm[None, :])[None, :, :],
                              link_score[i].shape)
        yl = jnp.broadcast_to(gt_link[i].astype(f32), link_score[i].shape)
        loss += jnp.mean((link_score[i] * mk - yl) ** 2)
    return loss


if __name__ == "__main__":
    key = jax.random.PRNGKey(0)
    det_split = (5, 6, 7)          # detections per frame (3 frames, 2 link pairs)
    L = sum(det_split)             # 18 total detections
    C = 3                          # det_score is 3 x L per the module docstring

    ks = jax.random.split(key, 8)
    det_score = jax.random.normal(ks[0], (C, L), jnp.float32)
    gt_det = (jax.random.uniform(ks[1], (L,)) > 0.5).astype(jnp.float32)

    new_score = jax.random.normal(ks[2], (C, L - det_split[0]), jnp.float32)
    gt_new = (jax.random.uniform(ks[3], (L,)) > 0.5).astype(jnp.float32)
    gt_new = gt_new.at[jnp.array([3, 9])].set(-1.0)      # exercise ignore mask

    end_score = jax.random.normal(ks[4], (C, L - det_split[-1]), jnp.float32)
    gt_end = (jax.random.uniform(ks[5], (L,)) > 0.5).astype(jnp.float32)
    gt_end = gt_end.at[jnp.array([2])].set(-1.0)

    link_score, gt_link = [], []
    lk = jax.random.split(ks[6], 2 * (len(det_split) - 1))
    for i in range(len(det_split) - 1):
        cn, nn_ = det_split[i], det_split[i + 1]
        link_score.append(jax.random.normal(lk[2 * i], (C, cn, nn_), jnp.float32))
        gt_link.append((jax.random.uniform(lk[2 * i + 1], (1, cn, nn_)) > 0.5)
                       .astype(jnp.float32))

    loss_fn = jax.jit(tracking_loss, static_argnums=(0,))
    loss = loss_fn(det_split, gt_det, gt_link, gt_new, gt_end,
                   det_score, link_score, new_score, end_score)
    loss = jax.block_until_ready(loss)

    ref = _reference(det_split, gt_det, gt_link, gt_new, gt_end,
                     det_score, link_score, new_score, end_score)
    assert jnp.allclose(loss, ref, rtol=1e-5, atol=1e-5), (loss, ref)

    print("KERNEL_OK")
</pallas_src>

<mosaic_0001>
module attributes {stable_mosaic.version = 11 : i64} {
  func.func @_mse_ignore_sum_kernel(%arg0: i32, %arg1: memref<3x13xf32, #tpu.memory_space<vmem>>, %arg2: memref<1x13xf32, #tpu.memory_space<vmem>>, %arg3: memref<1x1xf32, #tpu.memory_space<vmem>>) attributes {dimension_semantics = [#tpu.dimension_semantics<arbitrary>], iteration_bounds = array<i64: 1>, scalar_prefetch = 0 : i64, scratch_operands = 0 : i64, tpu.core_type = #tpu.core_type<tc>, window_params = [{transform_indices = @transform_0, window_bounds = array<i64: 3, 13>}, {transform_indices = @transform_1, window_bounds = array<i64: 1, 13>}, {pipeline_mode = #tpu.pipeline_mode<synchronous>, transform_indices = @transform_2, window_bounds = array<i64: 1, 1>}]} {
    %c0_i32 = arith.constant 0 : i32
    %0 = arith.cmpi eq, %arg0, %c0_i32 : i32
    %1 = arith.extui %0 : i1 to i32
    %c0_i32_0 = arith.constant 0 : i32
    %2 = arith.cmpi ne, %1, %c0_i32_0 : i32
    scf.if %2 {
      %cst_10 = arith.constant 0.000000e+00 : f32
      %21 = vector.broadcast %cst_10 : f32 to vector<1x1xf32>
      %c0_11 = arith.constant 0 : index
      %c0_12 = arith.constant 0 : index
      %22 = vector.load %arg3[%c0_11, %c0_12] : memref<1x1xf32, #tpu.memory_space<vmem>>, vector<1x1xf32>
      tpu.vector_store %arg3[%c0_11, %c0_12], %21 {strides = array<i32>} : memref<1x1xf32, #tpu.memory_space<vmem>>, vector<1x1xf32>,
    } else {
    }
    %c0 = arith.constant 0 : index
    %c0_1 = arith.constant 0 : index
    %3 = vector.load %arg1[%c0, %c0_1] : memref<3x13xf32, #tpu.memory_space<vmem>>, vector<3x13xf32>
    %c0_2 = arith.constant 0 : index
    %c0_3 = arith.constant 0 : index
    %4 = vector.load %arg2[%c0_2, %c0_3] : memref<1x13xf32, #tpu.memory_space<vmem>>, vector<1x13xf32>
    %cst = arith.constant -1.000000e+00 : f32
    %5 = vector.broadcast %cst : f32 to vector<1x13xf32>
    %6 = arith.cmpf one, %4, %5 : vector<1x13xf32>
    %7 = arith.extui %6 : vector<1x13xi1> to vector<1x13xi32>
    %8 = arith.sitofp %7 : vector<1x13xi32> to vector<1x13xf32>
    %9 = vector.broadcast %8 : vector<1x13xf32> to vector<3x13xf32>
    %10 = arith.mulf %3, %9 : vector<3x13xf32>
    %11 = vector.broadcast %4 : vector<1x13xf32> to vector<3x13xf32>
    %12 = arith.subf %10, %11 : vector<3x13xf32>
    %13 = arith.mulf %12, %12 : vector<3x13xf32>
    %c0_4 = arith.constant 0 : index
    %c0_5 = arith.constant 0 : index
    %14 = vector.load %arg3[%c0_4, %c0_5] : memref<1x1xf32, #tpu.memory_space<vmem>>, vector<1x1xf32>
    %cst_6 = arith.constant dense<0.000000e+00> : vector<13xf32>
    %15 = vector.multi_reduction <add>, %13, %cst_6 [0] : vector<3x13xf32> to vector<13xf32>
    %16 = vector.shape_cast %15 : vector<13xf32> to vector<1x13xf32>
    %cst_7 = arith.constant dense<0.000000e+00> : vector<1xf32>
    %17 = vector.multi_reduction <add>, %16, %cst_7 [1] : vector<1x13xf32> to vector<1xf32>
    %18 = vector.shape_cast %17 : vector<1xf32> to vector<1x1xf32>
    %19 = arith.addf %14, %18 : vector<1x1xf32>
    %c0_8 = arith.constant 0 : index
    %c0_9 = arith.constant 0 : index
    %20 = vector.load %arg3[%c0_8, %c0_9] : memref<1x1xf32, #tpu.memory_space<vmem>>, vector<1x1xf32>
    tpu.vector_store %arg3[%c0_8, %c0_9], %19 {strides = array<i32>} : memref<1x1xf32, #tpu.memory_space<vmem>>, vector<1x1xf32>,
    return
  }
  func.func @transform_0(%arg0: i32) -> (i32, i32) {
    %c0_i32 = arith.constant 0 : i32
    %c0_i32_0 = arith.constant 0 : i32
    return %c0_i32, %arg0 : i32, i32
  }
  func.func @transform_1(%arg0: i32) -> (i32, i32) {
    %c0_i32 = arith.constant 0 : i32
    %c0_i32_0 = arith.constant 0 : i32
    return %c0_i32, %arg0 : i32, i32
  }
  func.func @transform_2(%arg0: i32) -> (i32, i32) {
    %c0_i32 = arith.constant 0 : i32
    %c0_i32_0 = arith.constant 0 : i32
    %c0_i32_1 = arith.constant 0 : i32
    return %c0_i32, %c0_i32_0 : i32, i32
  }
}

module attributes {stable_mosaic.version = 11 : i64} {
  func.func @_bce_sum_kernel(%arg0: i32, %arg1: memref<3x18xf32, #tpu.memory_space<vmem>>, %arg2: memref<1x18xf32, #tpu.memory_space<vmem>>, %arg3: memref<1x1xf32, #tpu.memory_space<vmem>>) attributes {dimension_semantics = [#tpu.dimension_semantics<arbitrary>], iteration_bounds = array<i64: 1>, scalar_prefetch = 0 : i64, scratch_operands = 0 : i64, tpu.core_type = #tpu.core_type<tc>, window_params = [{transform_indices = @transform_0, window_bounds = array<i64: 3, 18>}, {transform_indices = @transform_1, window_bounds = array<i64: 1, 18>}, {pipeline_mode = #tpu.pipeline_mode<synchronous>, transform_indices = @transform_2, window_bounds = array<i64: 1, 1>}]} {
    %c0_i32 = arith.constant 0 : i32
    %0 = arith.cmpi eq, %arg0, %c0_i32 : i32
    %1 = arith.extui %0 : i1 to i32
    %c0_i32_0 = arith.constant 0 : i32
    %2 = arith.cmpi ne, %1, %c0_i32_0 : i32
    scf.if %2 {
      %cst_11 = arith.constant 0.000000e+00 : f32
      %23 = vector.broadcast %cst_11 : f32 to vector<1x1xf32>
      %c0_12 = arith.constant 0 : index
      %c0_13 = arith.constant 0 : index
      %24 = vector.load %arg3[%c0_12, %c0_13] : memref<1x1xf32, #tpu.memory_space<vmem>>, vector<1x1xf32>
      tpu.vector_store %arg3[%c0_12, %c0_13], %23 {strides = array<i32>} : memref<1x1xf32, #tpu.memory_space<vmem>>, vector<1x1xf32>,
    } else {
    }
    %c0 = arith.constant 0 : index
    %c0_1 = arith.constant 0 : index
    %3 = vector.load %arg1[%c0, %c0_1] : memref<3x18xf32, #tpu.memory_space<vmem>>, vector<3x18xf32>
    %c0_2 = arith.constant 0 : index
    %c0_3 = arith.constant 0 : index
    %4 = vector.load %arg2[%c0_2, %c0_3] : memref<1x18xf32, #tpu.memory_space<vmem>>, vector<1x18xf32>
    %cst = arith.constant 0.000000e+00 : f32
    %5 = vector.broadcast %cst : f32 to vector<3x18xf32>
    %6 = arith.maximumf %3, %5 : vector<3x18xf32>
    %7 = vector.broadcast %4 : vector<1x18xf32> to vector<3x18xf32>
    %8 = arith.mulf %3, %7 : vector<3x18xf32>
    %9 = arith.subf %6, %8 : vector<3x18xf32>
    %10 = math.absf %3 : vector<3x18xf32>
    %cst_4 = arith.constant 0.000000e+00 : f32
    %11 = vector.broadcast %cst_4 : f32 to vector<3x18xf32>
    %12 = arith.subf %11, %10 : vector<3x18xf32>
    %13 = math.exp %12 : vector<3x18xf32>
    %14 = math.log1p %13 : vector<3x18xf32>
    %15 = arith.addf %9, %14 : vector<3x18xf32>
    %c0_5 = arith.constant 0 : index
    %c0_6 = arith.constant 0 : index
    %16 = vector.load %arg3[%c0_5, %c0_6] : memref<1x1xf32, #tpu.memory_space<vmem>>, vector<1x1xf32>
    %cst_7 = arith.constant dense<0.000000e+00> : vector<18xf32>
    %17 = vector.multi_reduction <add>, %15, %cst_7 [0] : vector<3x18xf32> to vector<18xf32>
    %18 = vector.shape_cast %17 : vector<18xf32> to vector<1x18xf32>
    %cst_8 = arith.constant dense<0.000000e+00> : vector<1xf32>
    %19 = vector.multi_reduction <add>, %18, %cst_8 [1] : vector<1x18xf32> to vector<1xf32>
    %20 = vector.shape_cast %19 : vector<1xf32> to vector<1x1xf32>
    %21 = arith.addf %16, %20 : vector<1x1xf32>
    %c0_9 = arith.constant 0 : index
    %c0_10 = arith.constant 0 : index
    %22 = vector.load %arg3[%c0_9, %c0_10] : memref<1x1xf32, #tpu.memory_space<vmem>>, vector<1x1xf32>
    tpu.vector_store %arg3[%c0_9, %c0_10], %21 {strides = array<i32>} : memref<1x1xf32, #tpu.memory_space<vmem>>, vector<1x1xf32>,
    return
  }
  func.func @transform_0(%arg0: i32) -> (i32, i32) {
    %c0_i32 = arith.constant 0 : i32
    %c0_i32_0 = arith.constant 0 : i32
    return %c0_i32, %arg0 : i32, i32
  }
  func.func @transform_1(%arg0: i32) -> (i32, i32) {
    %c0_i32 = arith.constant 0 : i32
    %c0_i32_0 = arith.constant 0 : i32
    return %c0_i32, %arg0 : i32, i32
  }
  func.func @transform_2(%arg0: i32) -> (i32, i32) {
    %c0_i32 = arith.constant 0 : i32
    %c0_i32_0 = arith.constant 0 : i32
    %c0_i32_1 = arith.constant 0 : i32
    return %c0_i32, %c0_i32_0 : i32, i32
  }
}

module attributes {stable_mosaic.version = 11 : i64} {
  func.func @_mse_ignore_sum_kernel(%arg0: i32, %arg1: memref<3x11xf32, #tpu.memory_space<vmem>>, %arg2: memref<1x11xf32, #tpu.memory_space<vmem>>, %arg3: memref<1x1xf32, #tpu.memory_space<vmem>>) attributes {dimension_semantics = [#tpu.dimension_semantics<arbitrary>], iteration_bounds = array<i64: 1>, scalar_prefetch = 0 : i64, scratch_operands = 0 : i64, tpu.core_type = #tpu.core_type<tc>, window_params = [{transform_indices = @transform_0, window_bounds = array<i64: 3, 11>}, {transform_indices = @transform_1, window_bounds = array<i64: 1, 11>}, {pipeline_mode = #tpu.pipeline_mode<synchronous>, transform_indices = @transform_2, window_bounds = array<i64: 1, 1>}]} {
    %c0_i32 = arith.constant 0 : i32
    %0 = arith.cmpi eq, %arg0, %c0_i32 : i32
    %1 = arith.extui %0 : i1 to i32
    %c0_i32_0 = arith.constant 0 : i32
    %2 = arith.cmpi ne, %1, %c0_i32_0 : i32
    scf.if %2 {
      %cst_10 = arith.constant 0.000000e+00 : f32
      %21 = vector.broadcast %cst_10 : f32 to vector<1x1xf32>
      %c0_11 = arith.constant 0 : index
      %c0_12 = arith.constant 0 : index
      %22 = vector.load %arg3[%c0_11, %c0_12] : memref<1x1xf32, #tpu.memory_space<vmem>>, vector<1x1xf32>
      tpu.vector_store %arg3[%c0_11, %c0_12], %21 {strides = array<i32>} : memref<1x1xf32, #tpu.memory_space<vmem>>, vector<1x1xf32>,
    } else {
    }
    %c0 = arith.constant 0 : index
    %c0_1 = arith.constant 0 : index
    %3 = vector.load %arg1[%c0, %c0_1] : memref<3x11xf32, #tpu.memory_space<vmem>>, vector<3x11xf32>
    %c0_2 = arith.constant 0 : index
    %c0_3 = arith.constant 0 : index
    %4 = vector.load %arg2[%c0_2, %c0_3] : memref<1x11xf32, #tpu.memory_space<vmem>>, vector<1x11xf32>
    %cst = arith.constant -1.000000e+00 : f32
    %5 = vector.broadcast %cst : f32 to vector<1x11xf32>
    %6 = arith.cmpf one, %4, %5 : vector<1x11xf32>
    %7 = arith.extui %6 : vector<1x11xi1> to vector<1x11xi32>
    %8 = arith.sitofp %7 : vector<1x11xi32> to vector<1x11xf32>
    %9 = vector.broadcast %8 : vector<1x11xf32> to vector<3x11xf32>
    %10 = arith.mulf %3, %9 : vector<3x11xf32>
    %11 = vector.broadcast %4 : vector<1x11xf32> to vector<3x11xf32>
    %12 = arith.subf %10, %11 : vector<3x11xf32>
    %13 = arith.mulf %12, %12 : vector<3x11xf32>
    %c0_4 = arith.constant 0 : index
    %c0_5 = arith.constant 0 : index
    %14 = vector.load %arg3[%c0_4, %c0_5] : memref<1x1xf32, #tpu.memory_space<vmem>>, vector<1x1xf32>
    %cst_6 = arith.constant dense<0.000000e+00> : vector<11xf32>
    %15 = vector.multi_reduction <add>, %13, %cst_6 [0] : vector<3x11xf32> to vector<11xf32>
    %16 = vector.shape_cast %15 : vector<11xf32> to vector<1x11xf32>
    %cst_7 = arith.constant dense<0.000000e+00> : vector<1xf32>
    %17 = vector.multi_reduction <add>, %16, %cst_7 [1] : vector<1x11xf32> to vector<1xf32>
    %18 = vector.shape_cast %17 : vector<1xf32> to vector<1x1xf32>
    %19 = arith.addf %14, %18 : vector<1x1xf32>
    %c0_8 = arith.constant 0 : index
    %c0_9 = arith.constant 0 : index
    %20 = vector.load %arg3[%c0_8, %c0_9] : memref<1x1xf32, #tpu.memory_space<vmem>>, vector<1x1xf32>
    tpu.vector_store %arg3[%c0_8, %c0_9], %19 {strides = array<i32>} : memref<1x1xf32, #tpu.memory_space<vmem>>, vector<1x1xf32>,
    return
  }
  func.func @transform_0(%arg0: i32) -> (i32, i32) {
    %c0_i32 = arith.constant 0 : i32
    %c0_i32_0 = arith.constant 0 : i32
    return %c0_i32, %arg0 : i32, i32
  }
  func.func @transform_1(%arg0: i32) -> (i32, i32) {
    %c0_i32 = arith.constant 0 : i32
    %c0_i32_0 = arith.constant 0 : i32
    return %c0_i32, %arg0 : i32, i32
  }
  func.func @transform_2(%arg0: i32) -> (i32, i32) {
    %c0_i32 = arith.constant 0 : i32
    %c0_i32_0 = arith.constant 0 : i32
    %c0_i32_1 = arith.constant 0 : i32
    return %c0_i32, %c0_i32_0 : i32, i32
  }
}

module attributes {stable_mosaic.version = 11 : i64} {
  func.func @_link_sum_kernel(%arg0: i32, %arg1: memref<3x6x7xf32, #tpu.memory_space<vmem>>, %arg2: memref<1x6x7xf32, #tpu.memory_space<vmem>>, %arg3: memref<6x1xf32, #tpu.memory_space<vmem>>, %arg4: memref<1x7xf32, #tpu.memory_space<vmem>>, %arg5: memref<1x1xf32, #tpu.memory_space<vmem>>) attributes {dimension_semantics = [#tpu.dimension_semantics<arbitrary>], iteration_bounds = array<i64: 1>, scalar_prefetch = 0 : i64, scratch_operands = 0 : i64, tpu.core_type = #tpu.core_type<tc>, window_params = [{pipeline_mode = #tpu.pipeline_mode<synchronous>, transform_indices = @transform_0, window_bounds = array<i64: 3, 6, 7>}, {pipeline_mode = #tpu.pipeline_mode<synchronous>, transform_indices = @transform_1, window_bounds = array<i64: 1, 6, 7>}, {pipeline_mode = #tpu.pipeline_mode<synchronous>, transform_indices = @transform_2, window_bounds = array<i64: 6, 1>}, {pipeline_mode = #tpu.pipeline_mode<synchronous>, transform_indices = @transform_3, window_bounds = array<i64: 1, 7>}, {pipeline_mode = #tpu.pipeline_mode<synchronous>, transform_indices = @transform_4, window_bounds = array<i64: 1, 1>}]} {
    %c0 = arith.constant 0 : index
    %c0_0 = arith.constant 0 : index
    %c0_1 = arith.constant 0 : index
    %0 = vector.load %arg1[%c0, %c0_0, %c0_1] : memref<3x6x7xf32, #tpu.memory_space<vmem>>, vector<3x6x7xf32>
    %c0_2 = arith.constant 0 : index
    %c0_3 = arith.constant 0 : index
    %c0_4 = arith.constant 0 : index
    %1 = vector.load %arg2[%c0_2, %c0_3, %c0_4] : memref<1x6x7xf32, #tpu.memory_space<vmem>>, vector<1x6x7xf32>
    %c0_5 = arith.constant 0 : index
    %c0_6 = arith.constant 0 : index
    %2 = vector.load %arg3[%c0_5, %c0_6] : memref<6x1xf32, #tpu.memory_space<vmem>>, vector<6x1xf32>
    %cst = arith.constant 1.000000e+00 : f32
    %3 = vector.broadcast %cst : f32 to vector<6x1xf32>
    %4 = arith.cmpf oeq, %2, %3 : vector<6x1xf32>
    %5 = arith.extui %4 : vector<6x1xi1> to vector<6x1xi32>
    %6 = arith.sitofp %5 : vector<6x1xi32> to vector<6x1xf32>
    %c0_7 = arith.constant 0 : index
    %c0_8 = arith.constant 0 : index
    %7 = vector.load %arg4[%c0_7, %c0_8] : memref<1x7xf32, #tpu.memory_space<vmem>>, vector<1x7xf32>
    %cst_9 = arith.constant 1.000000e+00 : f32
    %8 = vector.broadcast %cst_9 : f32 to vector<1x7xf32>
    %9 = arith.cmpf oeq, %7, %8 : vector<1x7xf32>
    %10 = arith.extui %9 : vector<1x7xi1> to vector<1x7xi32>
    %11 = arith.sitofp %10 : vector<1x7xi32> to vector<1x7xf32>
    %12 = vector.broadcast %6 : vector<6x1xf32> to vector<6x7xf32>
    %13 = vector.broadcast %11 : vector<1x7xf32> to vector<6x7xf32>
    %14 = arith.mulf %12, %13 : vector<6x7xf32>
    %15 = vector.shape_cast %14 : vector<6x7xf32> to vector<1x6x7xf32>
    %16 = vector.broadcast %15 : vector<1x6x7xf32> to vector<3x6x7xf32>
    %17 = arith.mulf %0, %16 : vector<3x6x7xf32>
    %18 = vector.broadcast %1 : vector<1x6x7xf32> to vector<3x6x7xf32>
    %19 = arith.subf %17, %18 : vector<3x6x7xf32>
    %20 = arith.mulf %19, %19 : vector<3x6x7xf32>
    %cst_10 = arith.constant dense<0.000000e+00> : vector<6x7xf32>
    %21 = vector.multi_reduction <add>, %20, %cst_10 [0] : vector<3x6x7xf32> to vector<6x7xf32>
    %cst_11 = arith.constant dense<0.000000e+00> : vector<7xf32>
    %22 = vector.multi_reduction <add>, %21, %cst_11 [0] : vector<6x7xf32> to vector<7xf32>
    %23 = vector.shape_cast %22 : vector<7xf32> to vector<1x7xf32>
    %cst_12 = arith.constant dense<0.000000e+00> : vector<1xf32>
    %24 = vector.multi_reduction <add>, %23, %cst_12 [1] : vector<1x7xf32> to vector<1xf32>
    %25 = vector.shape_cast %24 : vector<1xf32> to vector<1x1xf32>
    %c0_13 = arith.constant 0 : index
    %c0_14 = arith.constant 0 : index
    %26 = vector.load %arg5[%c0_13, %c0_14] : memref<1x1xf32, #tpu.memory_space<vmem>>, vector<1x1xf32>
    tpu.vector_store %arg5[%c0_13, %c0_14], %25 {strides = array<i32>} : memref<1x1xf32, #tpu.memory_space<vmem>>, vector<1x1xf32>,
    return
  }
  func.func @transform_0(%arg0: i32) -> (i32, i32, i32) {
    %c0_i32 = arith.constant 0 : i32
    %c0_i32_0 = arith.constant 0 : i32
    %c0_i32_1 = arith.constant 0 : i32
    %c0_i32_2 = arith.constant 0 : i32
    return %c0_i32, %c0_i32_0, %c0_i32_1 : i32, i32, i32
  }
  func.func @transform_1(%arg0: i32) -> (i32, i32, i32) {
    %c0_i32 = arith.constant 0 : i32
    %c0_i32_0 = arith.constant 0 : i32
    %c0_i32_1 = arith.constant 0 : i32
    %c0_i32_2 = arith.constant 0 : i32
    return %c0_i32, %c0_i32_0, %c0_i32_1 : i32, i32, i32
  }
  func.func @transform_2(%arg0: i32) -> (i32, i32) {
    %c0_i32 = arith.constant 0 : i32
    %c0_i32_0 = arith.constant 0 : i32
    %c0_i32_1 = arith.constant 0 : i32
    return %c0_i32, %c0_i32_0 : i32, i32
  }
  func.func @transform_3(%arg0: i32) -> (i32, i32) {
    %c0_i32 = arith.constant 0 : i32
    %c0_i32_0 = arith.constant 0 : i32
    %c0_i32_1 = arith.constant 0 : i32
    return %c0_i32, %c0_i32_0 : i32, i32
  }
  func.func @transform_4(%arg0: i32) -> (i32, i32) {
    %c0_i32 = arith.constant 0 : i32
    %c0_i32_0 = arith.constant 0 : i32
    %c0_i32_1 = arith.constant 0 : i32
    return %c0_i32, %c0_i32_0 : i32, i32
  }
}

module attributes {stable_mosaic.version = 11 : i64} {
  func.func @_link_sum_kernel(%arg0: i32, %arg1: memref<3x5x6xf32, #tpu.memory_space<vmem>>, %arg2: memref<1x5x6xf32, #tpu.memory_space<vmem>>, %arg3: memref<5x1xf32, #tpu.memory_space<vmem>>, %arg4: memref<1x6xf32, #tpu.memory_space<vmem>>, %arg5: memref<1x1xf32, #tpu.memory_space<vmem>>) attributes {dimension_semantics = [#tpu.dimension_semantics<arbitrary>], iteration_bounds = array<i64: 1>, scalar_prefetch = 0 : i64, scratch_operands = 0 : i64, tpu.core_type = #tpu.core_type<tc>, window_params = [{pipeline_mode = #tpu.pipeline_mode<synchronous>, transform_indices = @transform_0, window_bounds = array<i64: 3, 5, 6>}, {pipeline_mode = #tpu.pipeline_mode<synchronous>, transform_indices = @transform_1, window_bounds = array<i64: 1, 5, 6>}, {pipeline_mode = #tpu.pipeline_mode<synchronous>, transform_indices = @transform_2, window_bounds = array<i64: 5, 1>}, {pipeline_mode = #tpu.pipeline_mode<synchronous>, transform_indices = @transform_3, window_bounds = array<i64: 1, 6>}, {pipeline_mode = #tpu.pipeline_mode<synchronous>, transform_indices = @transform_4, window_bounds = array<i64: 1, 1>}]} {
    %c0 = arith.constant 0 : index
    %c0_0 = arith.constant 0 : index
    %c0_1 = arith.constant 0 : index
    %0 = vector.load %arg1[%c0, %c0_0, %c0_1] : memref<3x5x6xf32, #tpu.memory_space<vmem>>, vector<3x5x6xf32>
    %c0_2 = arith.constant 0 : index
    %c0_3 = arith.constant 0 : index
    %c0_4 = arith.constant 0 : index
    %1 = vector.load %arg2[%c0_2, %c0_3, %c0_4] : memref<1x5x6xf32, #tpu.memory_space<vmem>>, vector<1x5x6xf32>
    %c0_5 = arith.constant 0 : index
    %c0_6 = arith.constant 0 : index
    %2 = vector.load %arg3[%c0_5, %c0_6] : memref<5x1xf32, #tpu.memory_space<vmem>>, vector<5x1xf32>
    %cst = arith.constant 1.000000e+00 : f32
    %3 = vector.broadcast %cst : f32 to vector<5x1xf32>
    %4 = arith.cmpf oeq, %2, %3 : vector<5x1xf32>
    %5 = arith.extui %4 : vector<5x1xi1> to vector<5x1xi32>
    %6 = arith.sitofp %5 : vector<5x1xi32> to vector<5x1xf32>
    %c0_7 = arith.constant 0 : index
    %c0_8 = arith.constant 0 : index
    %7 = vector.load %arg4[%c0_7, %c0_8] : memref<1x6xf32, #tpu.memory_space<vmem>>, vector<1x6xf32>
    %cst_9 = arith.constant 1.000000e+00 : f32
    %8 = vector.broadcast %cst_9 : f32 to vector<1x6xf32>
    %9 = arith.cmpf oeq, %7, %8 : vector<1x6xf32>
    %10 = arith.extui %9 : vector<1x6xi1> to vector<1x6xi32>
    %11 = arith.sitofp %10 : vector<1x6xi32> to vector<1x6xf32>
    %12 = vector.broadcast %6 : vector<5x1xf32> to vector<5x6xf32>
    %13 = vector.broadcast %11 : vector<1x6xf32> to vector<5x6xf32>
    %14 = arith.mulf %12, %13 : vector<5x6xf32>
    %15 = vector.shape_cast %14 : vector<5x6xf32> to vector<1x5x6xf32>
    %16 = vector.broadcast %15 : vector<1x5x6xf32> to vector<3x5x6xf32>
    %17 = arith.mulf %0, %16 : vector<3x5x6xf32>
    %18 = vector.broadcast %1 : vector<1x5x6xf32> to vector<3x5x6xf32>
    %19 = arith.subf %17, %18 : vector<3x5x6xf32>
    %20 = arith.mulf %19, %19 : vector<3x5x6xf32>
    %cst_10 = arith.constant dense<0.000000e+00> : vector<5x6xf32>
    %21 = vector.multi_reduction <add>, %20, %cst_10 [0] : vector<3x5x6xf32> to vector<5x6xf32>
    %cst_11 = arith.constant dense<0.000000e+00> : vector<6xf32>
    %22 = vector.multi_reduction <add>, %21, %cst_11 [0] : vector<5x6xf32> to vector<6xf32>
    %23 = vector.shape_cast %22 : vector<6xf32> to vector<1x6xf32>
    %cst_12 = arith.constant dense<0.000000e+00> : vector<1xf32>
    %24 = vector.multi_reduction <add>, %23, %cst_12 [1] : vector<1x6xf32> to vector<1xf32>
    %25 = vector.shape_cast %24 : vector<1xf32> to vector<1x1xf32>
    %c0_13 = arith.constant 0 : index
    %c0_14 = arith.constant 0 : index
    %26 = vector.load %arg5[%c0_13, %c0_14] : memref<1x1xf32, #tpu.memory_space<vmem>>, vector<1x1xf32>
    tpu.vector_store %arg5[%c0_13, %c0_14], %25 {strides = array<i32>} : memref<1x1xf32, #tpu.memory_space<vmem>>, vector<1x1xf32>,
    return
  }
  func.func @transform_0(%arg0: i32) -> (i32, i32, i32) {
    %c0_i32 = arith.constant 0 : i32
    %c0_i32_0 = arith.constant 0 : i32
    %c0_i32_1 = arith.constant 0 : i32
    %c0_i32_2 = arith.constant 0 : i32
    return %c0_i32, %c0_i32_0, %c0_i32_1 : i32, i32, i32
  }
  func.func @transform_1(%arg0: i32) -> (i32, i32, i32) {
    %c0_i32 = arith.constant 0 : i32
    %c0_i32_0 = arith.constant 0 : i32
    %c0_i32_1 = arith.constant 0 : i32
    %c0_i32_2 = arith.constant 0 : i32
    return %c0_i32, %c0_i32_0, %c0_i32_1 : i32, i32, i32
  }
  func.func @transform_2(%arg0: i32) -> (i32, i32) {
    %c0_i32 = arith.constant 0 : i32
    %c0_i32_0 = arith.constant 0 : i32
    %c0_i32_1 = arith.constant 0 : i32
    return %c0_i32, %c0_i32_0 : i32, i32
  }
  func.func @transform_3(%arg0: i32) -> (i32, i32) {
    %c0_i32 = arith.constant 0 : i32
    %c0_i32_0 = arith.constant 0 : i32
    %c0_i32_1 = arith.constant 0 : i32
    return %c0_i32, %c0_i32_0 : i32, i32
  }
  func.func @transform_4(%arg0: i32) -> (i32, i32) {
    %c0_i32 = arith.constant 0 : i32
    %c0_i32_0 = arith.constant 0 : i32
    %c0_i32_1 = arith.constant 0 : i32
    return %c0_i32, %c0_i32_0 : i32, i32
  }
}

</mosaic_0001>

<bundles_post_ra>
// kernel: tracking_loss.6
= control target key start
LH: loop header
LB: loop body
LE: loop exit
PB: predicated region body
PF: predicated region fallthrough
CT: control target
= control target key end

     0   :  { %vm16_vm1 = vcmask 0   ;;  %v94_v2 = vmov 0.0   ;;  %s125_s0 = inlined_call_operand.vmem [shape: f32[3,13], index: 0, kind: input, shape index: {}]   ;;  %s126_s1 = inlined_call_operand.vmem [shape: f32[1,13], index: 1, kind: input, shape index: {}]   ;;  %s127_s2 = inlined_call_operand.hbm [shape: f32[1,1], index: 2, kind: output, shape index: {}]  }
   0x1   :  { %v19_v0 = vld [vmem:[%s126_s1] sm:$0x1]  ;;  %17 = vst.msk [vmem:[#allocation2] sm:$0x1] %vm16_vm1, %v94_v2 }
   0x2   :  { %v18_v1 = vld [vmem:[%s125_s0] sm:$0x7]  ;;  %vm20_vm0 = vcmp.ne.f32.partialorder %v19_v0, -1.0 }
   0x3   :  { %v64_v3 = vsel %vm20_vm0, 1.0, %v94_v2 }
   0x4   :  { %7 = vsyncpa [#allocation3], 0  ;;  %v24_v4 = vperm.slane %v64_v3, 0  ;;  %v67_v5 = vld [vmem:[%s126_s1] ss:$0 sm:$0xff]  ;;  %vm33_vm2 = vcmask 100352  }
   0x5   :  { %vm41_vm3 = vcmask 105472   ;;  %s95_s0 = smov [#allocation2]   ;;  %s55_s1 = sshll.u32 %s127_s2, 4  ;;  %s56_s1 = int_to_ptr.hbm [resolvable:$true] %s55_s1 }
   0x6   :  { %v26_v6 = vmul.f32 %v24_v4, %v18_v1  ;;  %s53_s15 = sshll.u32 %s95_s0, 4  ;;  %s54_s15 = int_to_ptr.vmem [resolvable:$true] %s53_s15 }
   0x8   :  { %v30_v7 = vsub.f32 %v26_v6, %v67_v5  ;;  %v32_v17 = vld [vmem:[#allocation2] sm:$0x1] }
   0xa   :  { %v31_v8 = vmul.f32 %v30_v7, %v30_v7 }
   0xc   :  { %v34_v9 = vsel %vm33_vm2, %v31_v8, 0.0 }
   0xd   :  { %v35_v10 = vrot.slane %v34_v9, 4 }
   0xf   :  { %v36_v11 = vadd.f32 %v35_v10, %v34_v9 }
  0x11   :  { %v37_v12 = vrot.slane %v36_v11, 2 }
  0x13   :  { %v38_v13 = vadd.f32 %v37_v12, %v36_v11 }
  0x15   :  { %v39_v14 = vrot.slane %v38_v13, 1 }
  0x17   :  { %v40_v15 = vadd.f32 %v39_v14, %v38_v13 }
  0x19   :  { %v42_v16 = vsel %vm41_vm3, %v40_v15, 0.0 }
  0x1a   :  { %43 = vadd.xlane.f32.xlu0 %v42_v16 }
  0x8d   :  { %v44_v18 = vpop.xlane.xlu0 %43 }
  0x8e   :  { %v45_v19 = vadd.f32 %v44_v18, %v32_v17 }
  0x90   :  { %47 = vst.msk [vmem:[#allocation2] sm:$0x1] %vm16_vm1, %v45_v19 }
  0x91   :  { %58 = dma.vmem_to_hbm [thread:$0]  %s54_s15, 16, %s56_s1, [#allocation3]  }
  0x92   :  { %92 = dma.done.wait [#allocation3], 16  }
  0x93   :  { %93 = vsyncadd [#allocation3], 4294967280 }
  0x94   :  { %63 = vsyncpa [#allocation3], 1 }

// kernel: tracking_loss.5
= control target key start
LH: loop header
LB: loop body
LE: loop exit
PB: predicated region body
PF: predicated region fallthrough
CT: control target
= control target key end

     0   :  { %7 = vsyncpa [#allocation3], 0  ;;  %s176_s0 = inlined_call_operand.hbm [shape: f32[3,18], index: 0, kind: input, shape index: {}]   ;;  %s177_s1 = inlined_call_operand.vmem [shape: f32[1,18], index: 1, kind: input, shape index: {}]   ;;  %s178_s2 = inlined_call_operand.hbm [shape: f32[1,1], index: 2, kind: output, shape index: {}]  }
   0x1   :  { %8 = vsyncpa [#allocation4], 0  ;;  %s14_s11 = sshll.u32 %s176_s0, 4  ;;  %s147_s12 = smov [#allocation2]   ;;  %s15_s11 = int_to_ptr.hbm [resolvable:$true] %s14_s11 }
   0x2   :  { %s16_s13 = sshll.u32 %s147_s12, 4  ;;  %s17_s13 = int_to_ptr.vmem [resolvable:$true] %s16_s13 }
   0x3   :  { %19 = dma.hbm_to_vmem [thread:$0]  %s15_s11, 64, %s17_s13, [#allocation3]  }
   0x4   :  { %143 = dma.done.wait [#allocation3], 64  }
   0x5   :  { %144 = vsyncadd [#allocation3], 4294967232  ;;  %vm30_vm0 = vcmask 0   ;;  %v148_v0 = vmov 0.0   ;;  %v32_v1 = vld [vmem:[#allocation2] sm:$0x7] }
   0x6   :  { %31 = vst.msk [vmem:[#allocation5] sm:$0x1] %vm30_vm0, %v148_v0  ;;  %v40_v2 = vand.u32 2147483647, %v32_v1  ;;  %v90_v6 = vld [vmem:[%s177_s1] ss:$0 sm:$0xff] }
   0x7   :  { %v34_v10 = vmax.f32 %v32_v1, 0.0  ;;  %v38_v11 = vmul.f32 %v90_v6, %v32_v1  ;;  %vm55_vm2 = vcmask 141312   ;;  %vm63_vm3 = vcmask 146432   ;;  %s149_s0 = smov [#allocation5]   ;;  %s77_s18 = sshll.u32 %s178_s2, 4  ;;  %s78_s18 = int_to_ptr.hbm [resolvable:$true] %s77_s18 }
   0x8   :  { %v41_v3 = vsub.f32 0.0, %v40_v2  ;;  %s75_s1 = sshll.u32 %s149_s0, 4  ;;  %s76_s1 = int_to_ptr.vmem [resolvable:$true] %s75_s1 }
   0x9   :  { %v39_v15 = vsub.f32 %v34_v10, %v38_v11 }
   0xa   :  { %v42_v4 = vmul.f32 1.442695, %v41_v3 }
   0xc   :  { %91 = vpow2.f32 %v42_v4 }
   0xd   :  { %v54_v27 = vld [vmem:[#allocation5] sm:$0x1] }
  0x12   :  { %v92_v5 = vpop.eup %91 }
  0x13   :  { %v44_v7 = vadd.f32 1.0, %v92_v5  ;;  %v47_v8 = vmul.f32 -0.5, %v92_v5  ;;  %v50_v12 = vand.u32 2147483647, %v92_v5 }
  0x15   :  { %93 = vlog2.f32 %v44_v7  ;;  %v48_v9 = vadd.f32 1.0, %v47_v8  ;;  %vm51_vm1 = vcmp.lt.f32.partialorder %v50_v12, 0.0004427343 }
  0x17   :  { %v49_v13 = vmul.f32 %v92_v5, %v48_v9 }
  0x1b   :  { %v94_v14 = vpop.eup %93 }
  0x1c   :  { %v46_v16 = vmul.f32 0.6931472, %v94_v14 }
  0x1e   :  { %v52_v17 = vsel %vm51_vm1, %v49_v13, %v46_v16 }
  0x1f   :  { %v53_v18 = vadd.f32 %v52_v17, %v39_v15 }
  0x21   :  { %v56_v19 = vsel %vm55_vm2, %v53_v18, 0.0 }
  0x22   :  { %v57_v20 = vrot.slane %v56_v19, 4 }
  0x24   :  { %v58_v21 = vadd.f32 %v57_v20, %v56_v19 }
  0x26   :  { %v59_v22 = vrot.slane %v58_v21, 2 }
  0x28   :  { %v60_v23 = vadd.f32 %v59_v22, %v58_v21 }
  0x2a   :  { %v61_v24 = vrot.slane %v60_v23, 1 }
  0x2c   :  { %v62_v25 = vadd.f32 %v61_v24, %v60_v23 }
  0x2e   :  { %v64_v26 = vsel %vm63_vm3, %v62_v25, 0.0 }
  0x2f   :  { %65 = vadd.xlane.f32.xlu0 %v64_v26 }
  0xa2   :  { %v66_v28 = vpop.xlane.xlu0 %65 }
  0xa3   :  { %v67_v29 = vadd.f32 %v66_v28, %v54_v27 }
  0xa5   :  { %69 = vst.msk [vmem:[#allocation5] sm:$0x1] %vm30_vm0, %v67_v29 }
  0xa6   :  { %80 = dma.vmem_to_hbm [thread:$0]  %s76_s1, 16, %s78_s18, [#allocation4]  }
  0xa7   :  { %145 = dma.done.wait [#allocation4], 16  }
  0xa8   :  { %146 = vsyncadd [#allocation4], 4294967280 }
  0xa9   :  { %85 = vsyncpa [#allocation3], 1 }
  0xaa   :  { %86 = vsyncpa [#allocation4], 1 }

// kernel: tracking_loss.7
= control target key start
LH: loop header
LB: loop body
LE: loop exit
PB: predicated region body
PF: predicated region fallthrough
CT: control target
= control target key end

     0   :  { %vm16_vm1 = vcmask 0   ;;  %v94_v2 = vmov 0.0   ;;  %s125_s0 = inlined_call_operand.vmem [shape: f32[3,11], index: 0, kind: input, shape index: {}]   ;;  %s126_s1 = inlined_call_operand.vmem [shape: f32[1,11], index: 1, kind: input, shape index: {}]   ;;  %s127_s2 = inlined_call_operand.hbm [shape: f32[1,1], index: 2, kind: output, shape index: {}]  }
   0x1   :  { %v19_v0 = vld [vmem:[%s126_s1] sm:$0x1]  ;;  %17 = vst.msk [vmem:[#allocation2] sm:$0x1] %vm16_vm1, %v94_v2 }
   0x2   :  { %v18_v1 = vld [vmem:[%s125_s0] sm:$0x7]  ;;  %vm20_vm0 = vcmp.ne.f32.partialorder %v19_v0, -1.0 }
   0x3   :  { %v64_v3 = vsel %vm20_vm0, 1.0, %v94_v2 }
   0x4   :  { %7 = vsyncpa [#allocation3], 0  ;;  %v24_v4 = vperm.slane %v64_v3, 0  ;;  %v67_v5 = vld [vmem:[%s126_s1] ss:$0 sm:$0xff]  ;;  %vm33_vm2 = vcmask 83968  }
   0x5   :  { %vm41_vm3 = vcmask 89088   ;;  %s95_s0 = smov [#allocation2]   ;;  %s55_s1 = sshll.u32 %s127_s2, 4  ;;  %s56_s1 = int_to_ptr.hbm [resolvable:$true] %s55_s1 }
   0x6   :  { %v26_v6 = vmul.f32 %v24_v4, %v18_v1  ;;  %s53_s15 = sshll.u32 %s95_s0, 4  ;;  %s54_s15 = int_to_ptr.vmem [resolvable:$true] %s53_s15 }
   0x8   :  { %v30_v7 = vsub.f32 %v26_v6, %v67_v5  ;;  %v32_v17 = vld [vmem:[#allocation2] sm:$0x1] }
   0xa   :  { %v31_v8 = vmul.f32 %v30_v7, %v30_v7 }
   0xc   :  { %v34_v9 = vsel %vm33_vm2, %v31_v8, 0.0 }
   0xd   :  { %v35_v10 = vrot.slane %v34_v9, 4 }
   0xf   :  { %v36_v11 = vadd.f32 %v35_v10, %v34_v9 }
  0x11   :  { %v37_v12 = vrot.slane %v36_v11, 2 }
  0x13   :  { %v38_v13 = vadd.f32 %v37_v12, %v36_v11 }
  0x15   :  { %v39_v14 = vrot.slane %v38_v13, 1 }
  0x17   :  { %v40_v15 = vadd.f32 %v39_v14, %v38_v13 }
  0x19   :  { %v42_v16 = vsel %vm41_vm3, %v40_v15, 0.0 }
  0x1a   :  { %43 = vadd.xlane.f32.xlu0 %v42_v16 }
  0x8d   :  { %v44_v18 = vpop.xlane.xlu0 %43 }
  0x8e   :  { %v45_v19 = vadd.f32 %v44_v18, %v32_v17 }
  0x90   :  { %47 = vst.msk [vmem:[#allocation2] sm:$0x1] %vm16_vm1, %v45_v19 }
  0x91   :  { %58 = dma.vmem_to_hbm [thread:$0]  %s54_s15, 16, %s56_s1, [#allocation3]  }
  0x92   :  { %92 = dma.done.wait [#allocation3], 16  }
  0x93   :  { %93 = vsyncadd [#allocation3], 4294967280 }
  0x94   :  { %63 = vsyncpa [#allocation3], 1 }

// kernel: tracking_loss.9
= control target key start
LH: loop header
LB: loop body
LE: loop exit
PB: predicated region body
PF: predicated region fallthrough
CT: control target
= control target key end

     0   :  { %v115_v1 = vmov 0   ;;  %s164_s0 = inlined_call_operand.vmem [shape: f32[3,6,7], index: 0, kind: input, shape index: {}]   ;;  %s165_s1 = inlined_call_operand.vmem [shape: f32[1,6,7], index: 1, kind: input, shape index: {}]   ;;  %s166_s2 = inlined_call_operand.vmem [shape: f32[6,1], index: 2, kind: input, shape index: {}]   ;;  %s167_s3 = inlined_call_operand.vmem [shape: f32[1,7], index: 3, kind: input, shape index: {}]   ;;  %s168_s4 = inlined_call_operand.hbm [shape: f32[1,1], index: 4, kind: output, shape index: {}]  }
   0x1   :  { %v22_v0 = vld [vmem:[%s166_s2] sm:$0x3f]  ;;  %88 = vset.pattern.permute.xlu0 %v115_v1 }
   0x2   :  { %vm23_vm0 = vcmp.eq.f32.partialorder %v22_v0, 1.0 }
   0x3   :  { %9 = vsyncpa [#allocation3], 0  ;;  %v116_v2 = vmov 0.0   ;;  %v26_v4 = vld [vmem:[%s167_s3] sm:$0x1]  ;;  %vm48_vm2 = vcmask 54272  }
   0x4   :  { %v83_v3 = vsel %vm23_vm0, 1.0, %v116_v2  ;;  %vm27_vm1 = vcmp.eq.f32.partialorder %v26_v4, 1.0  ;;  %v18_v8 = vld [vmem:[%s164_s0] sm:$0x3f]  ;;  %v19_v9 = vld [vmem:[%s164_s0 + $0x8] sm:$0x3f] }
   0x5   :  { %32 = vperm.xlu0 %88, %v83_v3   ;;  %v84_v5 = vsel %vm27_vm1, 1.0, %v116_v2  ;;  %v20_v10 = vld [vmem:[%s164_s0 + $0x10] sm:$0x3f]  ;;  %v21_v12 = vld [vmem:[%s165_s1] sm:$0x3f]  ;;  %vm61_vm3 = vcmask 56320  }
   0x6   :  { %v36_v6 = vperm.slane %v84_v5, 0  ;;  %s117_s0 = smov [#allocation2]   ;;  %s74_s27 = sshll.u32 %s168_s4, 4  ;;  %vm65_vm4 = vcmask 0   ;;  %s75_s27 = int_to_ptr.hbm [resolvable:$true] %s74_s27 }
   0x7   :  { %s72_s1 = sshll.u32 %s117_s0, 4  ;;  %s73_s1 = int_to_ptr.vmem [resolvable:$true] %s72_s1 }
  0x77   :  { %v33_v7 = vpop.permute.xlu0 %32 }
  0x78   :  { %v38_v11 = vmul.f32 %v36_v6, %v33_v7 }
  0x7a   :  { %v39_v13 = vmul.f32 %v38_v11, %v18_v8  ;;  %v40_v14 = vmul.f32 %v38_v11, %v19_v9  ;;  %v41_v15 = vmul.f32 %v38_v11, %v20_v10 }
  0x7c   :  { %v42_v16 = vsub.f32 %v39_v13, %v21_v12  ;;  %v43_v17 = vsub.f32 %v40_v14, %v21_v12  ;;  %v44_v18 = vsub.f32 %v41_v15, %v21_v12 }
  0x7e   :  { %v45_v19 = vmul.f32 %v42_v16, %v42_v16  ;;  %v46_v20 = vmul.f32 %v43_v17, %v43_v17  ;;  %v47_v21 = vmul.f32 %v44_v18, %v44_v18 }
  0x80   :  { %v49_v22 = vsel %vm48_vm2, %v45_v19, 0.0  ;;  %v50_v23 = vsel %vm48_vm2, %v46_v20, 0.0  ;;  %v52_v25 = vsel %vm48_vm2, %v47_v21, 0.0 }
  0x81   :  { %v51_v24 = vadd.f32 %v50_v23, %v49_v22 }
  0x83   :  { %v53_v26 = vadd.f32 %v52_v25, %v51_v24 }
  0x85   :  { %v54_v27 = vsel %vm48_vm2, %v53_v26, 0.0 }
  0x86   :  { %v55_v28 = vrot.slane %v54_v27, 4 }
  0x88   :  { %v56_v29 = vadd.f32 %v55_v28, %v54_v27 }
  0x8a   :  { %v57_v30 = vrot.slane %v56_v29, 2 }
  0x8c   :  { %v58_v31 = vadd.f32 %v57_v30, %v56_v29 }
  0x8e   :  { %v59_v32 = vrot.slane %v58_v31, 1 }
  0x90   :  { %v60_v33 = vadd.f32 %v59_v32, %v58_v31 }
  0x92   :  { %v62_v34 = vsel %vm61_vm3, %v60_v33, 0.0 }
  0x93   :  { %63 = vadd.xlane.f32.xlu0 %v62_v34 }
 0x106   :  { %v64_v35 = vpop.xlane.xlu0 %63 }
 0x107   :  { %66 = vst.msk [vmem:[#allocation2] sm:$0x1] %vm65_vm4, %v64_v35 }
 0x108   :  { %77 = dma.vmem_to_hbm [thread:$0]  %s73_s1, 16, %s75_s27, [#allocation3]  }
 0x109   :  { %113 = dma.done.wait [#allocation3], 16  }
 0x10a   :  { %114 = vsyncadd [#allocation3], 4294967280 }
 0x10b   :  { %82 = vsyncpa [#allocation3], 1 }

// kernel: tracking_loss.8
= control target key start
LH: loop header
LB: loop body
LE: loop exit
PB: predicated region body
PF: predicated region fallthrough
CT: control target
= control target key end

     0   :  { %v115_v1 = vmov 0   ;;  %s164_s0 = inlined_call_operand.vmem [shape: f32[3,5,6], index: 0, kind: input, shape index: {}]   ;;  %s165_s1 = inlined_call_operand.vmem [shape: f32[1,5,6], index: 1, kind: input, shape index: {}]   ;;  %s166_s2 = inlined_call_operand.vmem [shape: f32[5,1], index: 2, kind: input, shape index: {}]   ;;  %s167_s3 = inlined_call_operand.vmem [shape: f32[1,6], index: 3, kind: input, shape index: {}]   ;;  %s168_s4 = inlined_call_operand.hbm [shape: f32[1,1], index: 4, kind: output, shape index: {}]  }
   0x1   :  { %v22_v0 = vld [vmem:[%s166_s2] sm:$0x1f]  ;;  %88 = vset.pattern.permute.xlu0 %v115_v1 }
   0x2   :  { %vm23_vm0 = vcmp.eq.f32.partialorder %v22_v0, 1.0 }
   0x3   :  { %9 = vsyncpa [#allocation3], 0  ;;  %v116_v2 = vmov 0.0   ;;  %v26_v4 = vld [vmem:[%s167_s3] sm:$0x1]  ;;  %vm48_vm2 = vcmask 45056  }
   0x4   :  { %v83_v3 = vsel %vm23_vm0, 1.0, %v116_v2  ;;  %vm27_vm1 = vcmp.eq.f32.partialorder %v26_v4, 1.0  ;;  %v18_v8 = vld [vmem:[%s164_s0] sm:$0x1f]  ;;  %v19_v9 = vld [vmem:[%s164_s0 + $0x8] sm:$0x1f] }
   0x5   :  { %32 = vperm.xlu0 %88, %v83_v3   ;;  %v84_v5 = vsel %vm27_vm1, 1.0, %v116_v2  ;;  %v20_v10 = vld [vmem:[%s164_s0 + $0x10] sm:$0x1f]  ;;  %v21_v12 = vld [vmem:[%s165_s1] sm:$0x1f]  ;;  %vm61_vm3 = vcmask 48128  }
   0x6   :  { %v36_v6 = vperm.slane %v84_v5, 0  ;;  %s117_s0 = smov [#allocation2]   ;;  %s74_s27 = sshll.u32 %s168_s4, 4  ;;  %vm65_vm4 = vcmask 0   ;;  %s75_s27 = int_to_ptr.hbm [resolvable:$true] %s74_s27 }
   0x7   :  { %s72_s1 = sshll.u32 %s117_s0, 4  ;;  %s73_s1 = int_to_ptr.vmem [resolvable:$true] %s72_s1 }
  0x77   :  { %v33_v7 = vpop.permute.xlu0 %32 }
  0x78   :  { %v38_v11 = vmul.f32 %v36_v6, %v33_v7 }
  0x7a   :  { %v39_v13 = vmul.f32 %v38_v11, %v18_v8  ;;  %v40_v14 = vmul.f32 %v38_v11, %v19_v9  ;;  %v41_v15 = vmul.f32 %v38_v11, %v20_v10 }
  0x7c   :  { %v42_v16 = vsub.f32 %v39_v13, %v21_v12  ;;  %v43_v17 = vsub.f32 %v40_v14, %v21_v12  ;;  %v44_v18 = vsub.f32 %v41_v15, %v21_v12 }
  0x7e   :  { %v45_v19 = vmul.f32 %v42_v16, %v42_v16  ;;  %v46_v20 = vmul.f32 %v43_v17, %v43_v17  ;;  %v47_v21 = vmul.f32 %v44_v18, %v44_v18 }
  0x80   :  { %v49_v22 = vsel %vm48_vm2, %v45_v19, 0.0  ;;  %v50_v23 = vsel %vm48_vm2, %v46_v20, 0.0  ;;  %v52_v25 = vsel %vm48_vm2, %v47_v21, 0.0 }
  0x81   :  { %v51_v24 = vadd.f32 %v50_v23, %v49_v22 }
  0x83   :  { %v53_v26 = vadd.f32 %v52_v25, %v51_v24 }
  0x85   :  { %v54_v27 = vsel %vm48_vm2, %v53_v26, 0.0 }
  0x86   :  { %v55_v28 = vrot.slane %v54_v27, 4 }
  0x88   :  { %v56_v29 = vadd.f32 %v55_v28, %v54_v27 }
  0x8a   :  { %v57_v30 = vrot.slane %v56_v29, 2 }
  0x8c   :  { %v58_v31 = vadd.f32 %v57_v30, %v56_v29 }
  0x8e   :  { %v59_v32 = vrot.slane %v58_v31, 1 }
  0x90   :  { %v60_v33 = vadd.f32 %v59_v32, %v58_v31 }
  0x92   :  { %v62_v34 = vsel %vm61_vm3, %v60_v33, 0.0 }
  0x93   :  { %63 = vadd.xlane.f32.xlu0 %v62_v34 }
 0x106   :  { %v64_v35 = vpop.xlane.xlu0 %63 }
 0x107   :  { %66 = vst.msk [vmem:[#allocation2] sm:$0x1] %vm65_vm4, %v64_v35 }
 0x108   :  { %77 = dma.vmem_to_hbm [thread:$0]  %s73_s1, 16, %s75_s27, [#allocation3]  }
 0x109   :  { %113 = dma.done.wait [#allocation3], 16  }
 0x10a   :  { %114 = vsyncadd [#allocation3], 4294967280 }
 0x10b   :  { %82 = vsyncpa [#allocation3], 1 }

</bundles_post_ra>
